<compile_context>
chip_gen: v7x
topology: tpu7x:2x2x1
jax: 0.10.0
libtpu: 0.0.40
codegen_flags: <defaults>
</compile_context>

<pallas_src>
import functools
import math

import jax
import jax.numpy as jnp
from jax.experimental import pallas as pl
from jax.experimental.pallas import tpu as pltpu


def _round_up(x, m):
    return (x + m - 1) // m * m


# --------------------------- Pallas kernel ----------------------------------

def _conv_gemm_kernel(w_ref, p_ref, o_ref):
    # (tco, K+1) @ (K+1, tm) on the MXU; bias is already folded into the GEMM
    # via the ones-row of p_ref / bias-column of w_ref.
    o_ref[...] = jnp.dot(w_ref[...], p_ref[...],
                         preferred_element_type=jnp.float32)


def conv3x3_s2_bias(x, w, b):
    """Conv2d(kernel=3x3, stride=2, padding=1) + bias, NCHW, one fused Pallas GEMM."""
    B, Cin, H, W = x.shape
    Cout = w.shape[0]
    stride = 2
    Ho = (H + 2 - 3) // stride + 1
    Wo = (W + 2 - 3) // stride + 1
    M = B * Ho * Wo
    K = Cin * 9
    K1 = K + 1                                  # +1 ones-row for the fused bias

    # ---- im2col in the wrapper (channels-major, transpose BEFORE the 9x slab) ----
    xt = jnp.transpose(x, (1, 0, 2, 3)).astype(jnp.float32)     # (Cin, B, H, W)
    xp = jnp.pad(xt, ((0, 0), (0, 0), (1, 1), (1, 1)))
    taps = []
    for kh in range(3):
        for kw in range(3):
            taps.append(xp[:, :,
                           kh:kh + stride * (Ho - 1) + 1:stride,
                           kw:kw + stride * (Wo - 1) + 1:stride])
    # Rows ordered (cin, kh, kw) to match PyTorch OIHW weights; columns (tokens)
    # ordered (b, ho, wo) and lane-dense.
    pat = jnp.stack(taps, axis=1).reshape(K, M)                  # (K, M)
    pat = jnp.concatenate([pat, jnp.ones((1, M), jnp.float32)], axis=0)  # (K+1, M)

    # Augmented weights: bias as an extra contraction column.
    w_mat = jnp.concatenate(
        [w.reshape(Cout, K).astype(jnp.float32),
         b.astype(jnp.float32).reshape(Cout, 1)], axis=1)        # (Cout, K+1)

    # ---- tiling ----
    Mp = _round_up(M, 128)
    tm = 128
    for cand in (4096, 2048, 1024, 512, 256, 128):
        if cand <= Mp and Mp % cand == 0:
            tm = cand
            break
    Cp = _round_up(Cout, 8)
    # Single Cout tile (patches resident, one DMA per M tile) unless there is
    # only one M tile, in which case split Cout so dual-TC chips get 2 cells.
    if Mp // tm >= 2 or Cp % 16 != 0:
        tco = Cp
    else:
        tco = Cp // 2

    if Mp != M:
        pat = jnp.pad(pat, ((0, 0), (0, Mp - M)))
    if Cp != Cout:
        w_mat = jnp.pad(w_mat, ((0, Cp - Cout), (0, 0)))

    # Grid: M tiles outer, Cout tiles inner -> patches block index constant
    # across consecutive steps (fetched once per M tile).
    out = pl.pallas_call(
        _conv_gemm_kernel,
        out_shape=jax.ShapeDtypeStruct((Cp, Mp), jnp.float32),
        grid=(Mp // tm, Cp // tco),
        in_specs=[
            pl.BlockSpec((tco, K1), lambda m, c: (c, 0)),
            pl.BlockSpec((K1, tm), lambda m, c: (0, m)),
        ],
        out_specs=pl.BlockSpec((tco, tm), lambda m, c: (c, m)),
        compiler_params=pltpu.CompilerParams(
            dimension_semantics=("parallel", "parallel")),
        # TODO(synk): allow_input_fusion on the patches operand could fuse the
        # im2col producer into the input pipeline and skip materializing the
        # (K+1, Mp) slab in HBM; left off to keep compilation robust.
    )(w_mat, pat)

    out = out[:Cout, :M]                                         # drop zero padding
    # NCHW to match the PyTorch module's output (downstream consumers could
    # instead take the channels-major (Cout, B, Ho, Wo) slab and skip this copy).
    return out.reshape(Cout, B, Ho, Wo).transpose(1, 0, 2, 3)


# --------------------------- Module forward ----------------------------------

def fourier_patch_embedding_forward(x, interms, params, combinations="first_order"):
    if combinations == "first_order":
        x = conv3x3_s2_bias(x, params["proj1_w"], params["proj1_b"])
    elif combinations == "second_order":
        x = conv3x3_s2_bias(x, params["proj1_0_w"], params["proj1_0_b"])
        x = conv3x3_s2_bias(x, params["proj1_1_w"], params["proj1_1_b"])
    else:
        # TODO(synk): 'inv_*' / '*_full' variants depend on SpectralTransform /
        # InvariantLayerj1, external modules not defined in this spec.
        raise NotImplementedError(combinations)
    return x, interms


if __name__ == "__main__":
    B, Cin, H, W = 2, 4, 16, 16
    Cout = 32

    key = jax.random.PRNGKey(0)
    kx, kw, kb = jax.random.split(key, 3)
    x = jax.random.normal(kx, (B, Cin, H, W), dtype=jnp.float32)
    bound = 1.0 / math.sqrt(Cin * 9)       # PyTorch Conv2d default init range
    w = jax.random.uniform(kw, (Cout, Cin, 3, 3), jnp.float32, -bound, bound)
    b = jax.random.uniform(kb, (Cout,), jnp.float32, -bound, bound)
    params = {"proj1_w": w, "proj1_b": b}

    fwd = jax.jit(functools.partial(fourier_patch_embedding_forward,
                                    combinations="first_order"))
    out, interms = fwd(x, [], params)
    jax.block_until_ready(out)

    assert out.shape == (B, Cout, H // 2, W // 2), out.shape

    # Cross-check against XLA's conv.
    ref = jax.lax.conv_general_dilated(
        x, w, window_strides=(2, 2), padding=((1, 1), (1, 1)),
        dimension_numbers=("NCHW", "OIHW", "NCHW")) + b[None, :, None, None]
    err = float(jnp.max(jnp.abs(out - ref)))
    assert err < 1e-3, f"max abs err {err}"

    print("KERNEL_OK")
</pallas_src>

<mosaic_0001>
module attributes {stable_mosaic.version = 11 : i64} {
  func.func @_conv_gemm_kernel(%arg0: i32, %arg1: i32, %arg2: memref<16x37xf32, #tpu.memory_space<vmem>>, %arg3: memref<37x128xf32, #tpu.memory_space<vmem>>, %arg4: memref<16x128xf32, #tpu.memory_space<vmem>>) attributes {dimension_semantics = [#tpu.dimension_semantics<parallel>, #tpu.dimension_semantics<parallel>], iteration_bounds = array<i64: 1, 2>, scalar_prefetch = 0 : i64, scratch_operands = 0 : i64, tpu.core_type = #tpu.core_type<tc>, window_params = [{transform_indices = @transform_0, window_bounds = array<i64: 16, 37>}, {transform_indices = @transform_1, window_bounds = array<i64: 37, 128>}, {transform_indices = @transform_2, window_bounds = array<i64: 16, 128>}]} {
    %c0 = arith.constant 0 : index
    %c0_0 = arith.constant 0 : index
    %0 = vector.load %arg2[%c0, %c0_0] : memref<16x37xf32, #tpu.memory_space<vmem>>, vector<16x37xf32>
    %c0_1 = arith.constant 0 : index
    %c0_2 = arith.constant 0 : index
    %1 = vector.load %arg3[%c0_1, %c0_2] : memref<37x128xf32, #tpu.memory_space<vmem>>, vector<37x128xf32>
    %cst = arith.constant dense<0.000000e+00> : vector<16x128xf32>
    %2 = tpu.matmul %0, %1, %cst {dimension_numbers = #tpu.dot_dimension_numbers<[1], [0], [0], [1], [0, 0, 1, 1], [], []>} : vector<16x37xf32>, vector<37x128xf32>, vector<16x128xf32> -> vector<16x128xf32>
    %c0_3 = arith.constant 0 : index
    %c0_4 = arith.constant 0 : index
    %3 = vector.load %arg4[%c0_3, %c0_4] : memref<16x128xf32, #tpu.memory_space<vmem>>, vector<16x128xf32>
    tpu.vector_store %arg4[%c0_3, %c0_4], %2 {strides = array<i32>} : memref<16x128xf32, #tpu.memory_space<vmem>>, vector<16x128xf32>,
    return
  }
  func.func @transform_0(%arg0: i32, %arg1: i32) -> (i32, i32) {
    %c0_i32 = arith.constant 0 : i32
    %c0_i32_0 = arith.constant 0 : i32
    return %arg1, %c0_i32 : i32, i32
  }
  func.func @transform_1(%arg0: i32, %arg1: i32) -> (i32, i32) {
    %c0_i32 = arith.constant 0 : i32
    %c0_i32_0 = arith.constant 0 : i32
    return %c0_i32, %arg0 : i32, i32
  }
  func.func @transform_2(%arg0: i32, %arg1: i32) -> (i32, i32) {
    %c0_i32 = arith.constant 0 : i32
    return %arg1, %arg0 : i32, i32
  }
}

</mosaic_0001>

<bundles_post_ra>
// kernel: fourier_patch_embedding_forward.1
= control target key start
LH: loop header
LB: loop body
LE: loop exit
PB: predicated region body
PF: predicated region fallthrough
CT: control target
= control target key end

     0   :  { %s475_s9 = smov 0   ;;  %s477_s10 = smov 0   ;;  %s523_s0 = inlined_call_operand.vmem [shape: f32[32,37], index: 0, kind: input, shape index: {}]   ;;  %s524_s1 = inlined_call_operand.vmem [shape: f32[37,128], index: 1, kind: input, shape index: {}]   ;;  %s525_s2 = inlined_call_operand.vmem [shape: f32[32,128], index: 2, kind: output, shape index: {}]  }
   0x1   :  { %s479_s11 = smov 0  }
   0x2 LB: > { %s21_s12 = sadd.s32 1, %s454_s10  ;;  %p374_p0 = scmp.ge.s32.totalorder %s458_s11, 1  ;;  %s458_s11 = sphi %s479_s11, %s12_s11   ;;  %s454_s10 = sphi %s477_s10, %s527_s10   ;;  %s450_s9 = sphi %s475_s9, %s526_s9  }
   0x3   : > { %p22_p1 = scmp.ge.s32.totalorder %s21_s12, 2  ;;  %p136_p2 = scmp.lt.s32.totalorder %s458_s11, 3 }
   0x5   : > { %s529_s12 = smov (%p22_p1, %s21_s12), 0  ;;  %p137_p3 = pnand %p374_p0, %p136_p2 }
   0x6   : > { %v186_v0 = vld [vmem:[%s524_s1] sm:$0xff] (!%p137_p3)  ;;  %v187_v1 = vld [vmem:[%s524_s1 + $0x8] sm:$0xff] (!%p137_p3)  ;;  %v188_v2 = vld [vmem:[%s524_s1 + $0x10] sm:$0xff] (!%p137_p3)  ;;  %s375_s19 = sshll.u32 (!%p137_p3), %s450_s9, 1  ;;  %vm191_vm0 = vcmask (!%p137_p3), 302080   ;;  %vm198_vm1 = vcmask (!%p137_p3), 1044480  }
   0x7   : > { %140 = sbr.rel (%p137_p3) target bundleno = 233 (0xe9), region = 28  ;;  %v404_v3 = vpack.c.bf16 (!%p137_p3), %v187_v1, %v186_v0  ;;  %v189_v4 = vld [vmem:[%s524_s1 + $0x18] sm:$0xff] (!%p137_p3)  ;;  %p166_p4 = scmp.lt.s32.totalorder (!%p137_p3), %s375_s19, 3  ;;  %v190_v6 = vld [vmem:[%s524_s1 + $0x20] sm:$0x1f] (!%p137_p3) }
   0x8   : > { %v408_v5 = vpack.c.bf16 (!%p137_p3), %v189_v4, %v188_v2 }
   0x9   : > { %405 = vmatprep.subr.bf16.mxu0 (!%p137_p3), %v404_v3 }
   0xa   : > { %407 = vmatpush3.bf16.msra.mxu0 (!%p137_p3), %v404_v3 }
   0xb   : > { %409 = vmatprep.subr.bf16.mxu0 (!%p137_p3), %v408_v5 }
   0xe   : > { %s531_s19 = smov (!%p166_p4, %s375_s19), 3  ;;  %411 = vmatpush3.bf16.msra.mxu0 %v408_v5 }
   0xf   : > { %s376_s22 = sshll.u32 %s531_s19, 3  ;;  %399 = vmatprep.subr.msk.mxu0 %vm198_vm1, %v190_v6 }
  0x10   : > { %s169_s27 = scalar_lea.vmem %s523_s0, %s376_s22  ;;  %s182_s30 = scalar_lea.vmem %s525_s2, %s376_s22 }
  0x11   : > { %v184_v7 = vld [vmem:[%s169_s27] sm:$0xff]  ;;  %v185_v8 = vld [vmem:[%s169_s27 + $0x8] sm:$0xff] }
  0x12   : > { %401 = vmatprep.mubr.msk.f32.mxu0 %vm191_vm0, %v184_v7  ;;  %400 = vmatpush3.msk.msra.mxu0 %vm198_vm1, %v190_v6 }
  0x13   : > { %402 = vmatmul.mubr.msk.f32.vlgmr.msra.gmra.mrb[0].mxu0 %vm191_vm0, %v185_v8 }
  0xe6   : > { %v403_v9 = vpop.f32.mrb[0].mxu0 }
  0xe7   : > { %v268_v10 = vpop.f32.mrb[1].mxu0  ;;  %278 = vst [vmem:[%s182_s30 + $0x8] sm:$0xff] %v403_v9 }
  0xe8   : > { %277 = vst [vmem:[%s182_s30] sm:$0xff] %v268_v10 }
  0xe9 PF: > { %s12_s11 = sadd.s32 1, %s458_s11   ;;  %s526_s9 = smov %s454_s10 }
  0xea   : > { %p9_p5 = scmp.ge.s32.totalorder %s12_s11, 4   ;;  %s527_s10 = smov %s529_s12 }
  0xec   :  { %11 = sbr.rel (!%p9_p5) target bundleno = 2 (0x2), region = 61 }

</bundles_post_ra>
